<compile_context>
chip_gen: v5e
topology: v5e:2x2
jax: 0.10.0
libtpu: 0.0.40
codegen_flags: <defaults>
</compile_context>

<pallas_src>
import functools

import jax
import jax.numpy as jnp
from jax.experimental import pallas as pl
from jax.experimental.pallas import tpu as pltpu


_INV_SQRT2 = 0.7071067811865476


def _round_up(x, m):
    return ((x + m - 1) // m) * m


def _sublane(itemsize):
    # second-minor VMEM tiling granularity by element width (f32: 8, bf16: 16, i8: 32)
    return {4: 8, 2: 16, 1: 32}.get(itemsize, 8)


def _vmem_budgets():
    """(vmem_limit_bytes, feats_stream_budget_bytes), TPU-generation aware."""
    cap = 64 << 20
    try:
        cap = int(getattr(pltpu.get_tpu_info(), "vmem_capacity_bytes", cap))
    except Exception:
        pass
    if cap >= (128 << 20):           # v5e / v6e: 128 MiB physical VMEM
        return 96 << 20, 72 << 20
    return 48 << 20, 32 << 20        # v7x-class: 64 MiB physical VMEM


def _choose_tiles(B, N, D, feats_itemsize, feats_budget, with_mask,
                  batch_tile=None, seq_tile=None):
    """Pick (TB, TN) so the double-buffered feats(+mask) blocks fit the budget.

    Uses the padded VMEM footprint: a (TB, TN, D) block costs
    TB * round_up(TN, sublane) * round_up(D, 128) * itemsize bytes, and the
    (TB, TN, 1) f32 mask block pads its lane dim all the way to 128.
    """
    if batch_tile is not None or seq_tile is not None:        # test / tuning override
        tb = batch_tile if batch_tile is not None else (B if B <= 8 else 8)
        tn = seq_tile if seq_tile is not None else N
        return min(tb, B), min(tn, N)

    sub_f = _sublane(feats_itemsize)
    lane_d = _round_up(D, 128)

    def block_bytes(tb, tn):
        b = tb * _round_up(tn, sub_f) * lane_d * feats_itemsize     # feats block
        if with_mask:
            b += tb * _round_up(tn, 8) * 128 * 4                    # f32 mask block
        return b

    per_buf = max(1, feats_budget // 2)      # streamed blocks are double-buffered

    # Preferred: full sequence per block, tile only the (parallel) batch axis.
    tb_fit = per_buf // block_bytes(1, N)
    if tb_fit >= min(B, 8):
        if B <= 8:
            return B, N
        # Cap TB so the batch axis has several grid steps: both v7x TensorCores
        # get work and the BlockSpec pipeline has steps to overlap.
        target_steps = 8 if B >= 64 else 4
        tb_cap = max(8, _round_up(-(-B // target_steps), 8))
        tb = min(tb_fit, tb_cap, B)
        tb = max(8, (tb // 8) * 8)
        return (B if tb >= B else tb), N

    # Fallback (very large N*D rows): minimal sublane-aligned batch slab, tile the
    # sequence axis and accumulate the pooled sum across it.
    tb = B if B <= 8 else 8
    group = block_bytes(tb, sub_f)
    n_groups = max(1, per_buf // group)
    tn = min(N, n_groups * sub_f)
    return tb, tn


def _const_spec(block_shape):
    """Constant-index weight/bias block: request a single VMEM buffer (no double buffer)."""
    index_map = lambda i, j: (0,) * len(block_shape)
    try:
        return pl.BlockSpec(block_shape, index_map, pipeline_mode=pl.Buffered(1))
    except TypeError:   # jax without BlockSpec.pipeline_mode -> default buffering
        return pl.BlockSpec(block_shape, index_map)


def _mlp_head(pooled, w1_ref, b1_ref, w2_row_ref, b2_ref):
    """GELU MLP head: (TB, D) -> (TB, 1)."""
    h = jnp.dot(pooled, w1_ref[...], preferred_element_type=jnp.float32) + b1_ref[...]
    # exact GELU: 0.5 * x * (1 + erf(x / sqrt(2)))  -- matches nn.GELU() default
    h = 0.5 * h * (1.0 + jax.lax.erf(h * jnp.float32(_INV_SQRT2)))
    # Linear(2D -> 1) on the VPU: elementwise mul + lane reduce (skip 1-wide MXU matmul)
    return jnp.sum(h * w2_row_ref[...], axis=-1, keepdims=True) + b2_ref[...]


def _predictor_masked_kernel(feats_ref, mask_ref, w1_ref, b1_ref, w2_row_ref,
                             b2_ref, out_ref, acc_ref, denom_ref,
                             *, seq_len, mask_seq_tail):
    j = pl.program_id(1)

    @pl.when(j == 0)
    def _init():
        acc_ref[...] = jnp.zeros_like(acc_ref)
        denom_ref[...] = jnp.zeros_like(denom_ref)

    feats = feats_ref[...].astype(jnp.float32)     # (TB, TN, D), upcast in-register
    m = mask_ref[...].astype(jnp.float32)          # (TB, TN, 1), N on sublanes

    if mask_seq_tail:   # partial last sequence block: zero out-of-range positions
        tn = feats_ref.shape[1]
        pos = j * tn + jax.lax.broadcasted_iota(jnp.int32, (1, tn, 1), 1)
        valid = pos < seq_len
        feats = jnp.where(valid, feats, 0.0)       # where (not *0) so garbage NaN can't leak
        m = jnp.where(valid, m, 0.0)

    # Masked pooling on the VPU: broadcast-mul + sublane reduce (hides under the feats DMA).
    acc_ref[...] += jnp.sum(feats * m, axis=1)     # (TB, D)
    denom_ref[...] += jnp.sum(m, axis=1)           # (TB, 1)

    @pl.when(j == pl.num_programs(1) - 1)
    def _finalize():
        # NOTE: an all-zero mask row yields inf/nan, matching the PyTorch reference.
        pooled = acc_ref[...] * pl.reciprocal(denom_ref[...], approx=False)
        out = _mlp_head(pooled, w1_ref, b1_ref, w2_row_ref, b2_ref)
        out_ref[...] = out.astype(out_ref.dtype)


def _predictor_mean_kernel(feats_ref, w1_ref, b1_ref, w2_row_ref, b2_ref,
                           out_ref, acc_ref, *, seq_len, mask_seq_tail):
    j = pl.program_id(1)

    @pl.when(j == 0)
    def _init():
        acc_ref[...] = jnp.zeros_like(acc_ref)

    feats = feats_ref[...].astype(jnp.float32)     # (TB, TN, D)
    if mask_seq_tail:
        tn = feats_ref.shape[1]
        pos = j * tn + jax.lax.broadcasted_iota(jnp.int32, (1, tn, 1), 1)
        feats = jnp.where(pos < seq_len, feats, 0.0)
    acc_ref[...] += jnp.sum(feats, axis=1)         # (TB, D)

    @pl.when(j == pl.num_programs(1) - 1)
    def _finalize():
        pooled = acc_ref[...] * jnp.float32(1.0 / seq_len)
        out = _mlp_head(pooled, w1_ref, b1_ref, w2_row_ref, b2_ref)
        out_ref[...] = out.astype(out_ref.dtype)


def predictor_forward(feats, mask, w1, b1, w2, b2, *, batch_tile=None, seq_tile=None):
    """feats: (B, N, D) float (streamed in native dtype), mask: (B, N) {0,1}.
    Returns (B, 1) float32."""
    B, N, D = feats.shape
    H = w1.shape[-1]                                # 2 * D
    itemsize = jnp.dtype(feats.dtype).itemsize
    vmem_limit, feats_budget = _vmem_budgets()
    TB, TN = _choose_tiles(B, N, D, itemsize, feats_budget, with_mask=True,
                           batch_tile=batch_tile, seq_tile=seq_tile)
    grid = (pl.cdiv(B, TB), pl.cdiv(N, TN))

    mask3 = mask.astype(jnp.float32).reshape(B, N, 1)   # N on sublanes (matches feats)
    w1f = w1.astype(jnp.float32)
    b1r = b1.reshape(1, H).astype(jnp.float32)
    w2r = w2.reshape(1, H).astype(jnp.float32)          # (2D, 1) -> row for VPU reduce
    b2r = b2.reshape(1, 1).astype(jnp.float32)

    kernel = functools.partial(_predictor_masked_kernel, seq_len=N,
                               mask_seq_tail=bool(N % TN))
    cost = pl.CostEstimate(
        flops=2 * B * N * D + 2 * B * D * H + 3 * B * H,
        transcendentals=B * H,
        bytes_accessed=B * N * D * itemsize + 4 * (B * N + D * H + 2 * H + 1 + B),
    )
    return pl.pallas_call(
        kernel,
        out_shape=jax.ShapeDtypeStruct((B, 1), jnp.float32),
        grid_spec=pltpu.PrefetchScalarGridSpec(
            num_scalar_prefetch=0,
            grid=grid,
            in_specs=[
                pl.BlockSpec((TB, TN, D), lambda i, j: (i, j, 0)),   # feats (native dtype)
                pl.BlockSpec((TB, TN, 1), lambda i, j: (i, j, 0)),   # mask
                _const_spec((D, H)),                                  # W1 (VMEM-resident)
                _const_spec((1, H)),                                  # b1
                _const_spec((1, H)),                                  # W2 row
                _const_spec((1, 1)),                                  # b2
            ],
            out_specs=pl.BlockSpec((TB, 1), lambda i, j: (i, 0)),
            scratch_shapes=[pltpu.VMEM((TB, D), jnp.float32),   # pooled-sum accumulator
                            pltpu.VMEM((TB, 1), jnp.float32)],  # mask-count accumulator
        ),
        compiler_params=pltpu.CompilerParams(
            dimension_semantics=("parallel", "arbitrary"),
            vmem_limit_bytes=vmem_limit,
        ),
        cost_estimate=cost,
    )(feats, mask3, w1f, b1r, w2r, b2r)


def predictor_forward_no_mask(feats, w1, b1, w2, b2, *, batch_tile=None, seq_tile=None):
    """Unmasked path: mean over the sequence axis (no ones-mask materialised)."""
    B, N, D = feats.shape
    H = w1.shape[-1]
    itemsize = jnp.dtype(feats.dtype).itemsize
    vmem_limit, feats_budget = _vmem_budgets()
    TB, TN = _choose_tiles(B, N, D, itemsize, feats_budget, with_mask=False,
                           batch_tile=batch_tile, seq_tile=seq_tile)
    grid = (pl.cdiv(B, TB), pl.cdiv(N, TN))

    w1f = w1.astype(jnp.float32)
    b1r = b1.reshape(1, H).astype(jnp.float32)
    w2r = w2.reshape(1, H).astype(jnp.float32)
    b2r = b2.reshape(1, 1).astype(jnp.float32)

    kernel = functools.partial(_predictor_mean_kernel, seq_len=N,
                               mask_seq_tail=bool(N % TN))
    cost = pl.CostEstimate(
        flops=B * N * D + 2 * B * D * H + 3 * B * H,
        transcendentals=B * H,
        bytes_accessed=B * N * D * itemsize + 4 * (D * H + 2 * H + 1 + B),
    )
    return pl.pallas_call(
        kernel,
        out_shape=jax.ShapeDtypeStruct((B, 1), jnp.float32),
        grid_spec=pltpu.PrefetchScalarGridSpec(
            num_scalar_prefetch=0,
            grid=grid,
            in_specs=[
                pl.BlockSpec((TB, TN, D), lambda i, j: (i, j, 0)),
                _const_spec((D, H)),
                _const_spec((1, H)),
                _const_spec((1, H)),
                _const_spec((1, 1)),
            ],
            out_specs=pl.BlockSpec((TB, 1), lambda i, j: (i, 0)),
            scratch_shapes=[pltpu.VMEM((TB, D), jnp.float32)],
        ),
        compiler_params=pltpu.CompilerParams(
            dimension_semantics=("parallel", "arbitrary"),
            vmem_limit_bytes=vmem_limit,
        ),
        cost_estimate=cost,
    )(feats, w1f, b1r, w2r, b2r)


if __name__ == "__main__":
    key = jax.random.PRNGKey(0)
    k_feats, k_mask, k_w1, k_b1, k_w2, k_b2 = jax.random.split(key, 6)

    B, N, D = 2, 8, 32
    H = 2 * D

    feats = jax.random.normal(k_feats, (B, N, D), dtype=jnp.float32)
    mask = (jax.random.uniform(k_mask, (B, N)) > 0.3).astype(jnp.float32)
    mask = mask.at[:, 0].set(1.0)            # at least one valid position per row

    # Linear weights stored as (in, out) so the kernel computes x @ W + b.
    w1 = jax.random.normal(k_w1, (D, H), dtype=jnp.float32) * 0.05
    b1 = jax.random.normal(k_b1, (1, H), dtype=jnp.float32) * 0.01
    w2 = jax.random.normal(k_w2, (H, 1), dtype=jnp.float32) * 0.05
    b2 = jax.random.normal(k_b2, (1, 1), dtype=jnp.float32) * 0.01

    # plain-JAX reference (eval mode: dropout is identity)
    def ref_head(p):
        return jax.nn.gelu(p @ w1 + b1, approximate=False) @ w2 + b2

    def ref_masked(f, m):
        pooled = jnp.sum(f * m[:, :, None], axis=1) / jnp.sum(m, axis=1, keepdims=True)
        return ref_head(pooled)

    def ref_mean(f):
        return ref_head(jnp.mean(f, axis=1))

    # 1) default tiling, f32 feats
    out_m = predictor_forward(feats, mask, w1, b1, w2, b2)
    out_u = predictor_forward_no_mask(feats, w1, b1, w2, b2)
    jax.block_until_ready((out_m, out_u))
    assert out_m.shape == (B, 1) and out_u.shape == (B, 1)
    assert jnp.allclose(out_m, ref_masked(feats, mask), atol=1e-4, rtol=1e-4)
    assert jnp.allclose(out_u, ref_mean(feats), atol=1e-4, rtol=1e-4)

    # 2) forced batch + sequence tiling (exercises accumulator + tail-mask path,
    #    partial last blocks on both grid axes)
    B2, N2 = 12, 24
    k_f2, k_m2 = jax.random.split(k_feats)
    feats2 = jax.random.normal(k_f2, (B2, N2, D), dtype=jnp.float32)
    mask2 = (jax.random.uniform(k_m2, (B2, N2)) > 0.3).astype(jnp.float32)
    mask2 = mask2.at[:, 0].set(1.0)
    out_m2 = predictor_forward(feats2, mask2, w1, b1, w2, b2,
                               batch_tile=8, seq_tile=16)
    out_u2 = predictor_forward_no_mask(feats2, w1, b1, w2, b2,
                                       batch_tile=8, seq_tile=16)
    jax.block_until_ready((out_m2, out_u2))
    assert jnp.allclose(out_m2, ref_masked(feats2, mask2), atol=1e-4, rtol=1e-4)
    assert jnp.allclose(out_u2, ref_mean(feats2), atol=1e-4, rtol=1e-4)

    # 3) bf16 feats streamed in native dtype, upcast in-kernel
    feats_bf16 = feats.astype(jnp.bfloat16)
    out_bf = predictor_forward(feats_bf16, mask, w1, b1, w2, b2)
    jax.block_until_ready(out_bf)
    ref_bf = ref_masked(feats_bf16.astype(jnp.float32), mask)
    assert jnp.allclose(out_bf, ref_bf, atol=1e-3, rtol=1e-3)

    print("KERNEL_OK")
</pallas_src>

<mosaic_0001>
module attributes {stable_mosaic.version = 11 : i64} {
  func.func @_predictor_masked_kernel(%arg0: i32, %arg1: i32, %arg2: memref<2x8x32xf32, #tpu.memory_space<vmem>>, %arg3: memref<2x8x1xf32, #tpu.memory_space<vmem>>, %arg4: memref<32x64xf32, #tpu.memory_space<vmem>>, %arg5: memref<1x64xf32, #tpu.memory_space<vmem>>, %arg6: memref<1x64xf32, #tpu.memory_space<vmem>>, %arg7: memref<1x1xf32, #tpu.memory_space<vmem>>, %arg8: memref<2x1xf32, #tpu.memory_space<vmem>>, %arg9: memref<2x32xf32, #tpu.memory_space<vmem>>, %arg10: memref<2x1xf32, #tpu.memory_space<vmem>>) attributes {dimension_semantics = [#tpu.dimension_semantics<parallel>, #tpu.dimension_semantics<arbitrary>], iteration_bounds = array<i64: 1, 1>, scalar_prefetch = 0 : i64, scratch_operands = 2 : i64, tpu.core_type = #tpu.core_type<tc>, window_params = [{transform_indices = @transform_0, window_bounds = array<i64: 2, 8, 32>}, {transform_indices = @transform_1, window_bounds = array<i64: 2, 8, 1>}, {pipeline_mode = #tpu.pipeline_mode<synchronous>, transform_indices = @transform_2, window_bounds = array<i64: 32, 64>}, {pipeline_mode = #tpu.pipeline_mode<synchronous>, transform_indices = @transform_3, window_bounds = array<i64: 1, 64>}, {pipeline_mode = #tpu.pipeline_mode<synchronous>, transform_indices = @transform_4, window_bounds = array<i64: 1, 64>}, {pipeline_mode = #tpu.pipeline_mode<synchronous>, transform_indices = @transform_5, window_bounds = array<i64: 1, 1>}, {transform_indices = @transform_6, window_bounds = array<i64: 2, 1>}]} {
    %c0_i32 = arith.constant 0 : i32
    %0 = arith.cmpi eq, %arg1, %c0_i32 : i32
    %1 = arith.extui %0 : i1 to i32
    %c0_i32_0 = arith.constant 0 : i32
    %2 = arith.cmpi ne, %1, %c0_i32_0 : i32
    scf.if %2 {
      %cst_17 = arith.constant 0.000000e+00 : f32
      %18 = vector.broadcast %cst_17 : f32 to vector<2x32xf32>
      %c0_18 = arith.constant 0 : index
      %c0_19 = arith.constant 0 : index
      %19 = vector.load %arg9[%c0_18, %c0_19] : memref<2x32xf32, #tpu.memory_space<vmem>>, vector<2x32xf32>
      tpu.vector_store %arg9[%c0_18, %c0_19], %18 {strides = array<i32>} : memref<2x32xf32, #tpu.memory_space<vmem>>, vector<2x32xf32>,
      %cst_20 = arith.constant 0.000000e+00 : f32
      %20 = vector.broadcast %cst_20 : f32 to vector<2x1xf32>
      %c0_21 = arith.constant 0 : index
      %c0_22 = arith.constant 0 : index
      %21 = vector.load %arg10[%c0_21, %c0_22] : memref<2x1xf32, #tpu.memory_space<vmem>>, vector<2x1xf32>
      tpu.vector_store %arg10[%c0_21, %c0_22], %20 {strides = array<i32>} : memref<2x1xf32, #tpu.memory_space<vmem>>, vector<2x1xf32>,
    } else {
    }
    %c0 = arith.constant 0 : index
    %c0_1 = arith.constant 0 : index
    %c0_2 = arith.constant 0 : index
    %3 = vector.load %arg2[%c0, %c0_1, %c0_2] : memref<2x8x32xf32, #tpu.memory_space<vmem>>, vector<2x8x32xf32>
    %c0_3 = arith.constant 0 : index
    %c0_4 = arith.constant 0 : index
    %c0_5 = arith.constant 0 : index
    %4 = vector.load %arg3[%c0_3, %c0_4, %c0_5] : memref<2x8x1xf32, #tpu.memory_space<vmem>>, vector<2x8x1xf32>
    %c0_6 = arith.constant 0 : index
    %c0_7 = arith.constant 0 : index
    %5 = vector.load %arg9[%c0_6, %c0_7] : memref<2x32xf32, #tpu.memory_space<vmem>>, vector<2x32xf32>
    %6 = vector.broadcast %4 : vector<2x8x1xf32> to vector<2x8x32xf32>
    %7 = arith.mulf %3, %6 : vector<2x8x32xf32>
    %cst = arith.constant dense<0.000000e+00> : vector<2x32xf32>
    %8 = vector.multi_reduction <add>, %7, %cst [1] : vector<2x8x32xf32> to vector<2x32xf32>
    %9 = arith.addf %5, %8 : vector<2x32xf32>
    %c0_8 = arith.constant 0 : index
    %c0_9 = arith.constant 0 : index
    %10 = vector.load %arg9[%c0_8, %c0_9] : memref<2x32xf32, #tpu.memory_space<vmem>>, vector<2x32xf32>
    tpu.vector_store %arg9[%c0_8, %c0_9], %9 {strides = array<i32>} : memref<2x32xf32, #tpu.memory_space<vmem>>, vector<2x32xf32>,
    %c0_10 = arith.constant 0 : index
    %c0_11 = arith.constant 0 : index
    %11 = vector.load %arg10[%c0_10, %c0_11] : memref<2x1xf32, #tpu.memory_space<vmem>>, vector<2x1xf32>
    %cst_12 = arith.constant dense<0.000000e+00> : vector<2x1xf32>
    %12 = vector.multi_reduction <add>, %4, %cst_12 [1] : vector<2x8x1xf32> to vector<2x1xf32>
    %13 = arith.addf %11, %12 : vector<2x1xf32>
    %c0_13 = arith.constant 0 : index
    %c0_14 = arith.constant 0 : index
    %14 = vector.load %arg10[%c0_13, %c0_14] : memref<2x1xf32, #tpu.memory_space<vmem>>, vector<2x1xf32>
    tpu.vector_store %arg10[%c0_13, %c0_14], %13 {strides = array<i32>} : memref<2x1xf32, #tpu.memory_space<vmem>>, vector<2x1xf32>,
    %c0_i32_15 = arith.constant 0 : i32
    %15 = arith.cmpi eq, %arg1, %c0_i32_15 : i32
    %16 = arith.extui %15 : i1 to i32
    %c0_i32_16 = arith.constant 0 : i32
    %17 = arith.cmpi ne, %16, %c0_i32_16 : i32
    scf.if %17 {
      %c0_17 = arith.constant 0 : index
      %c0_18 = arith.constant 0 : index
      %18 = vector.load %arg9[%c0_17, %c0_18] : memref<2x32xf32, #tpu.memory_space<vmem>>, vector<2x32xf32>
      %c0_19 = arith.constant 0 : index
      %c0_20 = arith.constant 0 : index
      %19 = vector.load %arg10[%c0_19, %c0_20] : memref<2x1xf32, #tpu.memory_space<vmem>>, vector<2x1xf32>
      %20 = tpu.reciprocal %19 : vector<2x1xf32> -> vector<2x1xf32>
      %21 = vector.broadcast %20 : vector<2x1xf32> to vector<2x32xf32>
      %22 = arith.mulf %18, %21 : vector<2x32xf32>
      %c0_21 = arith.constant 0 : index
      %c0_22 = arith.constant 0 : index
      %23 = vector.load %arg4[%c0_21, %c0_22] : memref<32x64xf32, #tpu.memory_space<vmem>>, vector<32x64xf32>
      %cst_23 = arith.constant dense<0.000000e+00> : vector<2x64xf32>
      %24 = tpu.matmul %22, %23, %cst_23 {dimension_numbers = #tpu.dot_dimension_numbers<[1], [0], [0], [1], [0, 0, 1, 1], [], []>} : vector<2x32xf32>, vector<32x64xf32>, vector<2x64xf32> -> vector<2x64xf32>
      %c0_24 = arith.constant 0 : index
      %c0_25 = arith.constant 0 : index
      %25 = vector.load %arg5[%c0_24, %c0_25] : memref<1x64xf32, #tpu.memory_space<vmem>>, vector<1x64xf32>
      %26 = vector.broadcast %25 : vector<1x64xf32> to vector<2x64xf32>
      %27 = arith.addf %24, %26 : vector<2x64xf32>
      %cst_26 = arith.constant 5.000000e-01 : f32
      %28 = vector.broadcast %cst_26 : f32 to vector<2x64xf32>
      %29 = arith.mulf %28, %27 : vector<2x64xf32>
      %cst_27 = arith.constant 0.707106769 : f32
      %30 = vector.broadcast %cst_27 : f32 to vector<2x64xf32>
      %31 = arith.mulf %27, %30 : vector<2x64xf32>
      %32 = math.erf %31 : vector<2x64xf32>
      %cst_28 = arith.constant 1.000000e+00 : f32
      %33 = vector.broadcast %cst_28 : f32 to vector<2x64xf32>
      %34 = arith.addf %33, %32 : vector<2x64xf32>
      %35 = arith.mulf %29, %34 : vector<2x64xf32>
      %c0_29 = arith.constant 0 : index
      %c0_30 = arith.constant 0 : index
      %36 = vector.load %arg6[%c0_29, %c0_30] : memref<1x64xf32, #tpu.memory_space<vmem>>, vector<1x64xf32>
      %37 = vector.broadcast %36 : vector<1x64xf32> to vector<2x64xf32>
      %38 = arith.mulf %35, %37 : vector<2x64xf32>
      %cst_31 = arith.constant dense<0.000000e+00> : vector<2xf32>
      %39 = vector.multi_reduction <add>, %38, %cst_31 [1] : vector<2x64xf32> to vector<2xf32>
      %40 = vector.shape_cast %39 : vector<2xf32> to vector<2x1xf32>
      %c0_32 = arith.constant 0 : index
      %c0_33 = arith.constant 0 : index
      %41 = vector.load %arg7[%c0_32, %c0_33] : memref<1x1xf32, #tpu.memory_space<vmem>>, vector<1x1xf32>
      %42 = vector.broadcast %41 : vector<1x1xf32> to vector<2x1xf32>
      %43 = arith.addf %40, %42 : vector<2x1xf32>
      %c0_34 = arith.constant 0 : index
      %c0_35 = arith.constant 0 : index
      %44 = vector.load %arg8[%c0_34, %c0_35] : memref<2x1xf32, #tpu.memory_space<vmem>>, vector<2x1xf32>
      tpu.vector_store %arg8[%c0_34, %c0_35], %43 {strides = array<i32>} : memref<2x1xf32, #tpu.memory_space<vmem>>, vector<2x1xf32>,
    } else {
    }
    return
  }
  func.func @transform_0(%arg0: i32, %arg1: i32) -> (i32, i32, i32) {
    %c0_i32 = arith.constant 0 : i32
    %c0_i32_0 = arith.constant 0 : i32
    return %arg0, %arg1, %c0_i32 : i32, i32, i32
  }
  func.func @transform_1(%arg0: i32, %arg1: i32) -> (i32, i32, i32) {
    %c0_i32 = arith.constant 0 : i32
    %c0_i32_0 = arith.constant 0 : i32
    return %arg0, %arg1, %c0_i32 : i32, i32, i32
  }
  func.func @transform_2(%arg0: i32, %arg1: i32) -> (i32, i32) {
    %c0_i32 = arith.constant 0 : i32
    %c0_i32_0 = arith.constant 0 : i32
    %c0_i32_1 = arith.constant 0 : i32
    return %c0_i32, %c0_i32_0 : i32, i32
  }
  func.func @transform_3(%arg0: i32, %arg1: i32) -> (i32, i32) {
    %c0_i32 = arith.constant 0 : i32
    %c0_i32_0 = arith.constant 0 : i32
    %c0_i32_1 = arith.constant 0 : i32
    return %c0_i32, %c0_i32_0 : i32, i32
  }
  func.func @transform_4(%arg0: i32, %arg1: i32) -> (i32, i32) {
    %c0_i32 = arith.constant 0 : i32
    %c0_i32_0 = arith.constant 0 : i32
    %c0_i32_1 = arith.constant 0 : i32
    return %c0_i32, %c0_i32_0 : i32, i32
  }
  func.func @transform_5(%arg0: i32, %arg1: i32) -> (i32, i32) {
    %c0_i32 = arith.constant 0 : i32
    %c0_i32_0 = arith.constant 0 : i32
    %c0_i32_1 = arith.constant 0 : i32
    return %c0_i32, %c0_i32_0 : i32, i32
  }
  func.func @transform_6(%arg0: i32, %arg1: i32) -> (i32, i32) {
    %c0_i32 = arith.constant 0 : i32
    %c0_i32_0 = arith.constant 0 : i32
    return %arg0, %c0_i32 : i32, i32
  }
}

</mosaic_0001>

<bundles_post_ra>
// kernel: tpu_custom_call.1
= control target key start
LH: loop header
LB: loop body
LE: loop exit
PB: predicated region body
PF: predicated region fallthrough
CT: control target
= control target key end

     0   :  { %s351_s0 = inlined_call_operand.vmem [shape: f32[2,8,32], index: 0, kind: input, shape index: {}]   ;;  %s352_s1 = inlined_call_operand.vmem [shape: f32[2,8,1], index: 1, kind: input, shape index: {}]   ;;  %s353_s2 = inlined_call_operand.hbm [shape: f32[32,64], index: 2, kind: input, shape index: {}]   ;;  %s354_s3 = inlined_call_operand.vmem [shape: f32[1,64], index: 3, kind: input, shape index: {}]   ;;  %s355_s4 = inlined_call_operand.vmem [shape: f32[1,64], index: 4, kind: input, shape index: {}]   ;;  %s356_s5 = inlined_call_operand.<no memory space> [shape: f32[1,1], index: 5, kind: input, shape index: {}]   ;;  %s357_s6 = inlined_call_operand.vmem [shape: f32[2,1], index: 6, kind: output, shape index: {}]  }
   0x1   :  { %v11_v0 = vstv %s356_s5 }
   0x2   :  { %12 = vst [vmem:[#allocation4] sm:$0x1] %v11_v0 }
   0x3   :  { %13 = vsyncpa [#allocation6], 0  ;;  %s22_s25 = sshll.u32 %s353_s2, 4  ;;  %s274_s26 = smov [#allocation5]   ;;  %s23_s25 = int_to_ptr.hbm [resolvable:$true] %s22_s25 }
   0x4   :  { %s24_s27 = sshll.u32 %s274_s26, 4  ;;  %s275_s28 = smov 128   ;;  %s25_s27 = int_to_ptr.vmem [resolvable:$true] %s24_s27 }
   0x5   :  { %s276_s29 = smov 8  }
   0x6   :  { %30 = dma.hbm_to_vmem [thread:$0]  %s23_s25, 512, %s25_s27, [#allocation6], %s275_s28, %s275_s28, %s276_s29  }
   0x7   :  { %272 = dma.done.wait [#allocation6], 512  }
   0x8   :  { %273 = vsyncadd [#allocation6], 4294966784  ;;  %vm45_vm0 = vcmask 254976   ;;  %v277_v1 = vmov 0   ;;  %vm47_vm1 = vcmask 1024   ;;  %v278_v2 = vmov 0.0  }
   0x9   :  { %239 = vset.pattern.permute.xlu0 %v277_v1  ;;  %46 = vst.msk [vmem:[#allocation2] sm:$0x3] %vm45_vm0, %v278_v2  ;;  %240 = vset.pattern.permute.xlu1 %v277_v1  ;;  %vm90_vm2 = vcmask 7168   ;;  %v51_v3 = vld [vmem:[%s352_s1] sm:$0xff]  ;;  %v52_v4 = vld [vmem:[%s352_s1 + $0x8] sm:$0xff]  ;;  %vm83_vm3 = vcmask 1041409  }
   0xa   :  { %48 = vst.msk [vmem:[#allocation3] sm:$0x3] %vm47_vm1, %v278_v2  ;;  %56 = vperm.xlu0 %239, %v51_v3   ;;  %v91_v5 = vsel %vm90_vm2, %v51_v3, 0.0  ;;  %v98_v6 = vsel %vm90_vm2, %v52_v4, 0.0  ;;  %v140_v33 = vld [vmem:[#allocation5 + $0x18] sm:$0xff]  ;;  %v139_v34 = vld [vmem:[#allocation5 + $0x10] sm:$0xff] }
   0xb   :  { %v92_v7 = vrot.slane %v91_v5, 4  ;;  %v99_v8 = vrot.slane %v98_v6, 4  ;;  %160 = vmatpush.msra.mxu0 %v140_v33  ;;  %v138_v35 = vld [vmem:[#allocation5 + $0x8] sm:$0xff]  ;;  %v49_v36 = vld [vmem:[%s351_s0] sm:$0xff]  ;;  %vm66_vm8 = vcmask 261120   ;;  %vm217_vm13 = vcmask 517120  }
   0xc   :  { %v50_v41 = vld [vmem:[%s351_s0 + $0x8] sm:$0xff]  ;;  %v241_v63 = vld [vmem:[%s354_s3] ss:$0 sm:$0xff] }
   0xd   :  { %v93_v9 = vadd.f32 %v92_v7, %v91_v5  ;;  %v100_v10 = vadd.f32 %v99_v8, %v98_v6  ;;  %161 = vmatpush.msra.mxu0 %v139_v34  ;;  %v137_v46 = vld [vmem:[#allocation5] sm:$0xff] }
   0xf   :  { %v94_v11 = vrot.slane %v93_v9, 2  ;;  %v101_v12 = vrot.slane %v100_v10, 2  ;;  %162 = vmatpush.msra.mxu0 %v138_v35 }
  0x10   :  { %v53_v57 = vld [vmem:[#allocation2] sm:$0x3] }
  0x11   :  { %v95_v13 = vadd.f32 %v94_v11, %v93_v9  ;;  %v102_v14 = vadd.f32 %v101_v12, %v100_v10  ;;  %v89_v19 = vld [vmem:[#allocation3] sm:$0x3]  ;;  %163 = vmatpush.msra.mxu0 %v137_v46 }
  0x12   :  { %61 = vperm.xlu0 %239, %v52_v4  }
  0x13   :  { %v96_v15 = vrot.slane %v95_v13, 1  ;;  %v103_v16 = vrot.slane %v102_v14, 1 }
  0x15   :  { %v97_v17 = vadd.f32 %v96_v15, %v95_v13  ;;  %v104_v18 = vadd.f32 %v103_v16, %v102_v14 }
  0x17   :  { %v107_v20 = vsel %vm83_vm3, %v104_v18, %v97_v17 }
  0x18   :  { %v109_v21 = vadd.f32 %v107_v20, %v89_v19 }
  0x1a   :  { %111 = vst.msk [vmem:[#allocation3] sm:$0x3] %vm47_vm1, %v109_v21 }
  0x21   :  { %v116_v22 = vld [vmem:[#allocation3] sm:$0x3] }
  0x22   :  { %244 = vrcp.f32 %v116_v22  ;;  %v128_v25 = vand.u32 2147483648, %v116_v22  ;;  %vm122_vm4 = vweird.f32 %v116_v22  ;;  %v126_v27 = vand.u32 2147483647, %v116_v22 }
  0x24   :  { %v129_v29 = vor.u32 1.1754944e-38, %v128_v25  ;;  %vm127_vm7 = vcmp.eq.f32.partialorder %v126_v27, 8.507059e+37 }
  0x28   :  { %v245_v23 = vpop.eup %244 }
  0x29   :  { %v118_v24 = vmul.f32 %v245_v23, %v116_v22  ;;  %vm123_vm5 = vweird.f32 %v245_v23 }
  0x2a   :  { %vm124_vm6 = vmor %vm122_vm4, %vm123_vm5 }
  0x2b   :  { %v119_v26 = vsub.f32 1.0, %v118_v24 }
  0x2d   :  { %v120_v28 = vmul.f32 %v245_v23, %v119_v26 }
  0x2f   :  { %v121_v30 = vadd.f32 %v245_v23, %v120_v28 }
  0x31   :  { %v125_v31 = vsel %vm124_vm6, %v245_v23, %v121_v30 }
  0x32   :  { %v130_v32 = vsel %vm127_vm7, %v129_v29, %v125_v31 }
  0x33   :  { %133 = vperm.xlu1 %240, %v130_v32  }
  0x7c   :  { %v57_v37 = vpop.permute.xlu0 %56 }
  0x7d   :  { %v64_v38 = vmul.f32 %v57_v37, %v49_v36 }
  0x7f   :  { %v67_v39 = vsel %vm66_vm8, %v64_v38, 0.0 }
  0x80   :  { %v68_v40 = vrot.slane %v67_v39, 4 }
  0x82   :  { %v69_v42 = vadd.f32 %v68_v40, %v67_v39  ;;  %v242_v40 = vld [vmem:[%s355_s4] ss:$0 sm:$0xff] }
  0x84   :  { %v62_v43 = vpop.permute.xlu0 %61  ;;  %v70_v45 = vrot.slane %v69_v42, 2 }
  0x85   :  { %v65_v44 = vmul.f32 %v62_v43, %v50_v41 }
  0x86   :  { %v71_v49 = vadd.f32 %v70_v45, %v69_v42 }
  0x87   :  { %v74_v47 = vsel %vm66_vm8, %v65_v44, 0.0  ;;  %v243_v44 = vld [vmem:[#allocation4] ss:$0 sm:$0xff] }
  0x88   :  { %v75_v48 = vrot.slane %v74_v47, 4  ;;  %v72_v52 = vrot.slane %v71_v49, 1 }
  0x8a   :  { %v76_v50 = vadd.f32 %v75_v48, %v74_v47  ;;  %v73_v55 = vadd.f32 %v72_v52, %v71_v49 }
  0x8c   :  { %v77_v51 = vrot.slane %v76_v50, 2 }
  0x8e   :  { %v78_v53 = vadd.f32 %v77_v51, %v76_v50 }
  0x90   :  { %v79_v54 = vrot.slane %v78_v53, 1 }
  0x92   :  { %v80_v56 = vadd.f32 %v79_v54, %v78_v53 }
  0x94   :  { %v84_v58 = vsel %vm83_vm3, %v80_v56, %v73_v55 }
  0x95   :  { %v86_v59 = vadd.f32 %v84_v58, %v53_v57 }
  0x97   :  { %88 = vst.msk [vmem:[#allocation2] sm:$0x3] %vm45_vm0, %v86_v59 }
  0x9e   :  { %v115_v61 = vld [vmem:[#allocation2] sm:$0x3] }
  0xa5   :  { %v134_v60 = vpop.permute.xlu1 %133 }
  0xa6   :  { %v136_v62 = vmul.f32 %v134_v60, %v115_v61 }
  0xa8   :  { %232 = vmatmul.msk.f32.vlgmr.msra.gmra.mxu0 %vm66_vm8, %v136_v62 }
 0x125   :  { %v165_v0 = vpop.f32.mrf.mxu0 }
 0x126   :  { %v166_v1 = vadd.f32 %v241_v63, %v165_v0 }
 0x128   :  { %v169_v2 = vmul.f32 0.70710677, %v166_v1  ;;  %v168_v38 = vmul.f32 0.5, %v166_v1 }
 0x12a   :  { %v170_v3 = vmul.f32 %v169_v2, %v169_v2 }
 0x12c   :  { %v171_v4 = vmin.f32 %v170_v3, 16.0 }
 0x12e   :  { %v172_v5 = vmul.f32 2.1237322e-06, %v171_v4  ;;  %v183_v6 = vmul.f32 3.8918573e-05, %v171_v4 }
 0x130   :  { %v173_v7 = vadd.f32 0.00028619796, %v172_v5  ;;  %v184_v8 = vadd.f32 0.001143296, %v183_v6 }
 0x132   :  { %v174_v9 = vmul.f32 %v173_v7, %v171_v4  ;;  %v185_v10 = vmul.f32 %v184_v8, %v171_v4 }
 0x134   :  { %v186_v11 = vadd.f32 0.014752088, %v185_v10  ;;  %v175_v12 = vadd.f32 0.0036580483, %v174_v9 }
 0x136   :  { %v187_v13 = vmul.f32 %v186_v11, %v171_v4  ;;  %v176_v15 = vmul.f32 %v175_v12, %v171_v4 }
 0x138   :  { %v188_v14 = vadd.f32 0.112945676, %v187_v13  ;;  %v177_v18 = vadd.f32 0.05243302, %v176_v15 }
 0x13a   :  { %v189_v16 = vmul.f32 %v188_v14, %v171_v4  ;;  %v178_v21 = vmul.f32 %v177_v18, %v171_v4 }
 0x13c   :  { %v190_v17 = vadd.f32 0.4994258, %v189_v16  ;;  %v179_v22 = vadd.f32 0.18741608, %v178_v21 }
 0x13e   :  { %v191_v19 = vmul.f32 %v190_v17, %v171_v4  ;;  %v180_v24 = vmul.f32 %v179_v22, %v171_v4 }
 0x140   :  { %v192_v20 = vadd.f32 1.0, %v191_v19  ;;  %v181_v28 = vadd.f32 1.1283791, %v180_v24 }
 0x142   :  { %246 = vrcp.f32 %v192_v20  ;;  %v204_v27 = vand.u32 2147483648, %v192_v20  ;;  %v202_v30 = vand.u32 2147483647, %v192_v20  ;;  %vm198_vm10 = vweird.f32 %v192_v20 }
 0x143   :  { %v182_v33 = vmul.f32 %v181_v28, %v169_v2 }
 0x144   :  { %v205_v32 = vor.u32 1.1754944e-38, %v204_v27  ;;  %vm203_vm12 = vcmp.eq.f32.partialorder %v202_v30, 8.507059e+37 }
 0x148   :  { %v247_v23 = vpop.eup %246 }
 0x149   :  { %v194_v25 = vmul.f32 %v247_v23, %v192_v20  ;;  %vm199_vm9 = vweird.f32 %v247_v23 }
 0x14a   :  { %vm200_vm11 = vmor %vm198_vm10, %vm199_vm9 }
 0x14b   :  { %v195_v26 = vsub.f32 1.0, %v194_v25 }
 0x14d   :  { %v196_v29 = vmul.f32 %v247_v23, %v195_v26 }
 0x14f   :  { %v197_v31 = vadd.f32 %v247_v23, %v196_v29 }
 0x151   :  { %v201_v34 = vsel %vm200_vm11, %v247_v23, %v197_v31 }
 0x152   :  { %v206_v35 = vsel %vm203_vm12, %v205_v32, %v201_v34 }
 0x153   :  { %v207_v36 = vmul.f32 %v206_v35, %v182_v33 }
 0x155   :  { %v233_v37 = vclamps-f32 %v207_v36, 1.0 }
 0x157   :  { %v210_v39 = vadd.f32 1.0, %v233_v37 }
 0x159   :  { %v211_v41 = vmul.f32 %v210_v39, %v168_v38 }
 0x15b   :  { %v216_v42 = vmul.f32 %v242_v40, %v211_v41 }
 0x15d   :  { %v218_v43 = vsel %vm217_vm13, %v216_v42, 0.0 }
 0x15e   :  { %219 = vadd.xlane.f32.xlu1 %v218_v43 }
 0x1d1   :  { %v220_v45 = vpop.xlane.xlu1 %219 }
 0x1d2   :  { %v225_v46 = vadd.f32 %v243_v44, %v220_v45 }
 0x1d4   :  { %226 = vst.msk [vmem:[%s357_s6] sm:$0x3] %vm47_vm1, %v225_v46 }
 0x1d5   :  { %231 = vsyncpa [#allocation6], 1 }

</bundles_post_ra>
